<compile_context>
chip_gen: v5e
topology: v5e:2x2
jax: 0.10.0
libtpu: 0.0.40
codegen_flags: <defaults>
</compile_context>

<pallas_src>
import jax
import jax.numpy as jnp
from jax import lax
from jax.experimental import pallas as pl
from jax.experimental.pallas import tpu as pltpu

IN_FEATURES = 48 * 4 * 4 + 10   # 778
HIDDEN = 100
OUT_FEATURES = 10
BN_EPS = 1e-5

H_PAD = 128                     # hidden padded to one full lane tile
O_PAD = 128                     # output padded to one full lane tile


def _round_up(n, m):
    return ((n + m - 1) // m) * m


def _discriminator_kernel(x_ref, w1_ref, b1_ref, w2_ref, b2_ref, w3_ref, b3_ref, o_ref):
    # Gradient-reversal layer is identity in the forward pass.
    x = x_ref[...]                                                    # (TB, 778) bf16

    # --- fc1 (+ folded bn1) + relu -------------------------------------------
    h = jnp.dot(x, w1_ref[...], preferred_element_type=jnp.float32) + b1_ref[...]
    h = jnp.maximum(h, 0.0)
    # Dropout: identity in eval mode.

    # --- fc2 (+ folded bn2) + relu -------------------------------------------
    h = jnp.dot(h.astype(jnp.bfloat16), w2_ref[...],
                preferred_element_type=jnp.float32) + b2_ref[...]
    h = jnp.maximum(h, 0.0)

    # --- fc3 (zero-padded to 128 lanes for a lane-dense, unmasked store) -----
    o_ref[...] = jnp.dot(h.astype(jnp.bfloat16), w3_ref[...],
                         preferred_element_type=jnp.float32) + b3_ref[...]


def _fold_and_pad(params):
    """Fold eval-mode BatchNorm + Linear bias into each layer, pad feature dims
    to 128 lanes, and cast matmul operands to bfloat16 (biases stay f32)."""

    def fold(w, b, g, be, m, v):
        s = g * lax.rsqrt(v + BN_EPS)          # (1, n) per-feature scale
        return w * s, (b - m) * s + be         # column-scaled W, folded bias

    w1, b1 = fold(params["w1"], params["b1"], params["g1"], params["be1"],
                  params["m1"], params["v1"])
    w2, b2 = fold(params["w2"], params["b2"], params["g2"], params["be2"],
                  params["m2"], params["v2"])
    w3, b3 = params["w3"], params["b3"]

    def pad_cols(a, n):
        return jnp.pad(a, ((0, 0), (0, n - a.shape[1])))

    def pad_rows(a, n):
        return jnp.pad(a, ((0, n - a.shape[0]), (0, 0)))

    w1p = pad_cols(w1, H_PAD)                       # (778, 128)
    b1p = pad_cols(b1, H_PAD)                       # (1, 128)
    w2p = pad_cols(pad_rows(w2, H_PAD), H_PAD)      # (128, 128)
    b2p = pad_cols(b2, H_PAD)                       # (1, 128)
    w3p = pad_cols(pad_rows(w3, H_PAD), O_PAD)      # (128, 128)
    b3p = pad_cols(b3, O_PAD)                       # (1, 128)

    bf = jnp.bfloat16
    return (w1p.astype(bf), b1p, w2p.astype(bf), b2p, w3p.astype(bf), b3p)


def can_discriminator_forward(x, params, *, block_b=512):
    """x: (B, 778) float32 -> (B, 10) float32."""
    B = x.shape[0]
    w1, b1, w2, b2, w3, b3 = _fold_and_pad(params)

    # Batch tile: multiple of 8 sublanes, capped at block_b; pad B up to a
    # multiple of the tile so the grid divides evenly.
    tb = min(block_b, _round_up(B, 8))
    Bp = _round_up(B, tb)
    xp = x if Bp == B else jnp.pad(x, ((0, Bp - B), (0, 0)))
    xp = xp.astype(jnp.bfloat16)

    grid = (Bp // tb,)
    const = lambda i: (0, 0)    # weights/biases: same block for every grid step

    flops = 2 * Bp * (IN_FEATURES * H_PAD + H_PAD * H_PAD + H_PAD * O_PAD)
    bytes_accessed = (
        xp.size * 2
        + (w1.size + w2.size + w3.size) * 2
        + (b1.size + b2.size + b3.size) * 4
        + Bp * O_PAD * 4
    )

    out = pl.pallas_call(
        _discriminator_kernel,
        out_shape=jax.ShapeDtypeStruct((Bp, O_PAD), jnp.float32),
        grid=grid,
        in_specs=[
            pl.BlockSpec((tb, IN_FEATURES), lambda i: (i, 0)),   # x (batch-tiled)
            pl.BlockSpec((IN_FEATURES, H_PAD), const),           # w1 (resident)
            pl.BlockSpec((1, H_PAD), const),                     # b1
            pl.BlockSpec((H_PAD, H_PAD), const),                 # w2
            pl.BlockSpec((1, H_PAD), const),                     # b2
            pl.BlockSpec((H_PAD, O_PAD), const),                 # w3
            pl.BlockSpec((1, O_PAD), const),                     # b3
        ],
        out_specs=pl.BlockSpec((tb, O_PAD), lambda i: (i, 0)),
        compiler_params=pltpu.CompilerParams(
            dimension_semantics=("parallel",)),
        cost_estimate=pl.CostEstimate(
            flops=flops, transcendentals=0, bytes_accessed=bytes_accessed),
    )(xp, w1, b1, w2, b2, w3, b3)

    return out[:B, :OUT_FEATURES]


def init_params(key):
    """Deterministic synthetic parameters matching the PyTorch module's shapes.

    Linear weights are stored transposed, i.e. (in_features, out_features).
    BatchNorm params: gamma, beta, running_mean, running_var (positive).
    1-D per-feature vectors are stored as (1, F) for broadcasting.
    """
    ks = jax.random.split(key, 16)

    def linear(kw, kb, fan_in, fan_out):
        bound = 1.0 / jnp.sqrt(jnp.float32(fan_in))
        w = jax.random.uniform(kw, (fan_in, fan_out), jnp.float32, -bound, bound)
        b = jax.random.uniform(kb, (1, fan_out), jnp.float32, -bound, bound)
        return w, b

    w1, b1 = linear(ks[0], ks[1], IN_FEATURES, HIDDEN)
    w2, b2 = linear(ks[2], ks[3], HIDDEN, HIDDEN)
    w3, b3 = linear(ks[4], ks[5], HIDDEN, OUT_FEATURES)

    def bn(kg, kb, km, kv, n):
        g = 1.0 + 0.1 * jax.random.normal(kg, (1, n), jnp.float32)
        be = 0.1 * jax.random.normal(kb, (1, n), jnp.float32)
        m = 0.1 * jax.random.normal(km, (1, n), jnp.float32)
        v = 1.0 + 0.1 * jax.random.uniform(kv, (1, n), jnp.float32)
        return g, be, m, v

    g1, be1, m1, v1 = bn(ks[6], ks[7], ks[8], ks[9], HIDDEN)
    g2, be2, m2, v2 = bn(ks[10], ks[11], ks[12], ks[13], HIDDEN)

    return dict(
        w1=w1, b1=b1, g1=g1, be1=be1, m1=m1, v1=v1,
        w2=w2, b2=b2, g2=g2, be2=be2, m2=m2, v2=v2,
        w3=w3, b3=b3,
    )


def reference_forward_f32(x, p):
    """Pure-JAX f32 reference (exact eval-mode semantics, unfolded BN)."""
    h = x @ p["w1"] + p["b1"]
    h = (h - p["m1"]) * lax.rsqrt(p["v1"] + BN_EPS) * p["g1"] + p["be1"]
    h = jnp.maximum(h, 0.0)
    h = h @ p["w2"] + p["b2"]
    h = (h - p["m2"]) * lax.rsqrt(p["v2"] + BN_EPS) * p["g2"] + p["be2"]
    h = jnp.maximum(h, 0.0)
    return h @ p["w3"] + p["b3"]


def reference_forward_bf16(x, p):
    """Pure-JAX reference that mimics the kernel's numerics exactly
    (folded BN, bf16 matmul operands, f32 accumulation)."""
    w1, b1, w2, b2, w3, b3 = _fold_and_pad(p)
    h = jnp.dot(x.astype(jnp.bfloat16), w1, preferred_element_type=jnp.float32) + b1
    h = jnp.maximum(h, 0.0)
    h = jnp.dot(h.astype(jnp.bfloat16), w2, preferred_element_type=jnp.float32) + b2
    h = jnp.maximum(h, 0.0)
    o = jnp.dot(h.astype(jnp.bfloat16), w3, preferred_element_type=jnp.float32) + b3
    return o[:, :OUT_FEATURES]


if __name__ == "__main__":
    key = jax.random.PRNGKey(0)
    k_x, k_p = jax.random.split(key)

    B = 8
    x = jax.random.normal(k_x, (B, IN_FEATURES), jnp.float32)
    params = init_params(k_p)

    out = can_discriminator_forward(x, params)
    out = jax.block_until_ready(out)
    assert out.shape == (B, OUT_FEATURES)

    # Tight check vs a reference with identical numerics (bf16 operands, f32 acc).
    ref_bf16 = reference_forward_bf16(x, params)
    assert jnp.allclose(out, ref_bf16, atol=2e-3, rtol=2e-3), "mismatch vs bf16 reference"

    # Loose semantic sanity check vs the exact f32, unfolded-BN reference.
    ref_f32 = reference_forward_f32(x, params)
    assert jnp.allclose(out, ref_f32, atol=1e-1, rtol=1e-1), "mismatch vs f32 reference"

    print("KERNEL_OK")
</pallas_src>

<mosaic_0001>
module attributes {stable_mosaic.version = 11 : i64} {
  func.func @_discriminator_kernel(%arg0: i32, %arg1: memref<8x778xbf16, #tpu.memory_space<vmem>>, %arg2: memref<778x128xbf16, #tpu.memory_space<vmem>>, %arg3: memref<1x128xf32, #tpu.memory_space<vmem>>, %arg4: memref<128x128xbf16, #tpu.memory_space<vmem>>, %arg5: memref<1x128xf32, #tpu.memory_space<vmem>>, %arg6: memref<128x128xbf16, #tpu.memory_space<vmem>>, %arg7: memref<1x128xf32, #tpu.memory_space<vmem>>, %arg8: memref<8x128xf32, #tpu.memory_space<vmem>>) attributes {dimension_semantics = [#tpu.dimension_semantics<parallel>], iteration_bounds = array<i64: 1>, scalar_prefetch = 0 : i64, scratch_operands = 0 : i64, tpu.core_type = #tpu.core_type<tc>, window_params = [{transform_indices = @transform_0, window_bounds = array<i64: 8, 778>}, {pipeline_mode = #tpu.pipeline_mode<synchronous>, transform_indices = @transform_1, window_bounds = array<i64: 778, 128>}, {pipeline_mode = #tpu.pipeline_mode<synchronous>, transform_indices = @transform_2, window_bounds = array<i64: 1, 128>}, {pipeline_mode = #tpu.pipeline_mode<synchronous>, transform_indices = @transform_3, window_bounds = array<i64: 128, 128>}, {pipeline_mode = #tpu.pipeline_mode<synchronous>, transform_indices = @transform_4, window_bounds = array<i64: 1, 128>}, {pipeline_mode = #tpu.pipeline_mode<synchronous>, transform_indices = @transform_5, window_bounds = array<i64: 128, 128>}, {pipeline_mode = #tpu.pipeline_mode<synchronous>, transform_indices = @transform_6, window_bounds = array<i64: 1, 128>}, {transform_indices = @transform_7, window_bounds = array<i64: 8, 128>}]} {
    %c0 = arith.constant 0 : index
    %c0_0 = arith.constant 0 : index
    %0 = vector.load %arg1[%c0, %c0_0] : memref<8x778xbf16, #tpu.memory_space<vmem>>, vector<8x778xbf16>
    %c0_1 = arith.constant 0 : index
    %c0_2 = arith.constant 0 : index
    %1 = vector.load %arg2[%c0_1, %c0_2] : memref<778x128xbf16, #tpu.memory_space<vmem>>, vector<778x128xbf16>
    %cst = arith.constant dense<0.000000e+00> : vector<8x128xf32>
    %2 = tpu.matmul %0, %1, %cst {dimension_numbers = #tpu.dot_dimension_numbers<[1], [0], [0], [1], [0, 0, 1, 1], [], []>} : vector<8x778xbf16>, vector<778x128xbf16>, vector<8x128xf32> -> vector<8x128xf32>
    %c0_3 = arith.constant 0 : index
    %c0_4 = arith.constant 0 : index
    %3 = vector.load %arg3[%c0_3, %c0_4] : memref<1x128xf32, #tpu.memory_space<vmem>>, vector<1x128xf32>
    %4 = vector.broadcast %3 : vector<1x128xf32> to vector<8x128xf32>
    %5 = arith.addf %2, %4 : vector<8x128xf32>
    %cst_5 = arith.constant 0.000000e+00 : f32
    %6 = vector.broadcast %cst_5 : f32 to vector<8x128xf32>
    %7 = arith.maximumf %5, %6 : vector<8x128xf32>
    %8 = arith.truncf %7 : vector<8x128xf32> to vector<8x128xbf16>
    %c0_6 = arith.constant 0 : index
    %c0_7 = arith.constant 0 : index
    %9 = vector.load %arg4[%c0_6, %c0_7] : memref<128x128xbf16, #tpu.memory_space<vmem>>, vector<128x128xbf16>
    %cst_8 = arith.constant dense<0.000000e+00> : vector<8x128xf32>
    %10 = tpu.matmul %8, %9, %cst_8 {dimension_numbers = #tpu.dot_dimension_numbers<[1], [0], [0], [1], [0, 0, 1, 1], [], []>} : vector<8x128xbf16>, vector<128x128xbf16>, vector<8x128xf32> -> vector<8x128xf32>
    %c0_9 = arith.constant 0 : index
    %c0_10 = arith.constant 0 : index
    %11 = vector.load %arg5[%c0_9, %c0_10] : memref<1x128xf32, #tpu.memory_space<vmem>>, vector<1x128xf32>
    %12 = vector.broadcast %11 : vector<1x128xf32> to vector<8x128xf32>
    %13 = arith.addf %10, %12 : vector<8x128xf32>
    %cst_11 = arith.constant 0.000000e+00 : f32
    %14 = vector.broadcast %cst_11 : f32 to vector<8x128xf32>
    %15 = arith.maximumf %13, %14 : vector<8x128xf32>
    %16 = arith.truncf %15 : vector<8x128xf32> to vector<8x128xbf16>
    %c0_12 = arith.constant 0 : index
    %c0_13 = arith.constant 0 : index
    %17 = vector.load %arg6[%c0_12, %c0_13] : memref<128x128xbf16, #tpu.memory_space<vmem>>, vector<128x128xbf16>
    %cst_14 = arith.constant dense<0.000000e+00> : vector<8x128xf32>
    %18 = tpu.matmul %16, %17, %cst_14 {dimension_numbers = #tpu.dot_dimension_numbers<[1], [0], [0], [1], [0, 0, 1, 1], [], []>} : vector<8x128xbf16>, vector<128x128xbf16>, vector<8x128xf32> -> vector<8x128xf32>
    %c0_15 = arith.constant 0 : index
    %c0_16 = arith.constant 0 : index
    %19 = vector.load %arg7[%c0_15, %c0_16] : memref<1x128xf32, #tpu.memory_space<vmem>>, vector<1x128xf32>
    %20 = vector.broadcast %19 : vector<1x128xf32> to vector<8x128xf32>
    %21 = arith.addf %18, %20 : vector<8x128xf32>
    %c0_17 = arith.constant 0 : index
    %c0_18 = arith.constant 0 : index
    %22 = vector.load %arg8[%c0_17, %c0_18] : memref<8x128xf32, #tpu.memory_space<vmem>>, vector<8x128xf32>
    tpu.vector_store %arg8[%c0_17, %c0_18], %21 {strides = array<i32>} : memref<8x128xf32, #tpu.memory_space<vmem>>, vector<8x128xf32>,
    return
  }
  func.func @transform_0(%arg0: i32) -> (i32, i32) {
    %c0_i32 = arith.constant 0 : i32
    %c0_i32_0 = arith.constant 0 : i32
    return %arg0, %c0_i32 : i32, i32
  }
  func.func @transform_1(%arg0: i32) -> (i32, i32) {
    %c0_i32 = arith.constant 0 : i32
    %c0_i32_0 = arith.constant 0 : i32
    %c0_i32_1 = arith.constant 0 : i32
    return %c0_i32, %c0_i32_0 : i32, i32
  }
  func.func @transform_2(%arg0: i32) -> (i32, i32) {
    %c0_i32 = arith.constant 0 : i32
    %c0_i32_0 = arith.constant 0 : i32
    %c0_i32_1 = arith.constant 0 : i32
    return %c0_i32, %c0_i32_0 : i32, i32
  }
  func.func @transform_3(%arg0: i32) -> (i32, i32) {
    %c0_i32 = arith.constant 0 : i32
    %c0_i32_0 = arith.constant 0 : i32
    %c0_i32_1 = arith.constant 0 : i32
    return %c0_i32, %c0_i32_0 : i32, i32
  }
  func.func @transform_4(%arg0: i32) -> (i32, i32) {
    %c0_i32 = arith.constant 0 : i32
    %c0_i32_0 = arith.constant 0 : i32
    %c0_i32_1 = arith.constant 0 : i32
    return %c0_i32, %c0_i32_0 : i32, i32
  }
  func.func @transform_5(%arg0: i32) -> (i32, i32) {
    %c0_i32 = arith.constant 0 : i32
    %c0_i32_0 = arith.constant 0 : i32
    %c0_i32_1 = arith.constant 0 : i32
    return %c0_i32, %c0_i32_0 : i32, i32
  }
  func.func @transform_6(%arg0: i32) -> (i32, i32) {
    %c0_i32 = arith.constant 0 : i32
    %c0_i32_0 = arith.constant 0 : i32
    %c0_i32_1 = arith.constant 0 : i32
    return %c0_i32, %c0_i32_0 : i32, i32
  }
  func.func @transform_7(%arg0: i32) -> (i32, i32) {
    %c0_i32 = arith.constant 0 : i32
    %c0_i32_0 = arith.constant 0 : i32
    return %arg0, %c0_i32 : i32, i32
  }
}

</mosaic_0001>

<bundles_post_ra>
// kernel: tpu_custom_call.1
= control target key start
LH: loop header
LB: loop body
LE: loop exit
PB: predicated region body
PF: predicated region fallthrough
CT: control target
= control target key end

     0   :  { %12 = vsyncpa [#allocation3], 0  ;;  %s1332_s0 = inlined_call_operand.hbm [shape: bf16[8,778], index: 0, kind: input, shape index: {}]   ;;  %s1333_s1 = inlined_call_operand.hbm [shape: bf16[778,128], index: 1, kind: input, shape index: {}]   ;;  %s1334_s2 = inlined_call_operand.vmem [shape: f32[1,128], index: 2, kind: input, shape index: {}]   ;;  %s1335_s3 = inlined_call_operand.hbm [shape: bf16[128,128], index: 3, kind: input, shape index: {}]   ;;  %s1336_s4 = inlined_call_operand.vmem [shape: f32[1,128], index: 4, kind: input, shape index: {}]   ;;  %s1337_s5 = inlined_call_operand.hbm [shape: bf16[128,128], index: 5, kind: input, shape index: {}]   ;;  %s1338_s6 = inlined_call_operand.vmem [shape: f32[1,128], index: 6, kind: input, shape index: {}]   ;;  %s1339_s7 = inlined_call_operand.hbm [shape: f32[8,128], index: 7, kind: output, shape index: {}]  }
   0x1   :  { %13 = vsyncpa [#allocation6], 0 }
   0x2   :  { %14 = vsyncpa [#allocation9], 0  ;;  %s31_s26 = sshll.u32 %s1333_s1, 4  ;;  %s32_s26 = int_to_ptr.hbm [resolvable:$true] %s31_s26 }
   0x3   :  { %15 = vsyncpa [#allocation4], 0  ;;  %s1261_s27 = smov [#allocation5]   ;;  %s21_s8 = sshll.u32 %s1332_s0, 4  ;;  %s22_s8 = int_to_ptr.hbm [resolvable:$true] %s21_s8 }
   0x4   :  { %s33_s28 = sshll.u32 %s1261_s27, 4  ;;  %s1262_s9 = smov 64   ;;  %s34_s28 = int_to_ptr.vmem [resolvable:$true] %s33_s28 }
   0x5   :  { %s1263_s10 = smov 4   ;;  %s1264_s11 = smov [#allocation2]  }
   0x6   :  { %39 = dma.hbm_to_vmem [thread:$0]  %s32_s26, 6272, %s34_s28, [#allocation6], %s1262_s9, %s1262_s9, %s1263_s10  }
   0x7   :  { %s23_s12 = sshll.u32 %s1264_s11, 4  ;;  %s46_s15 = sshll.u32 %s1335_s3, 4  ;;  %s24_s12 = int_to_ptr.vmem [resolvable:$true] %s23_s12  ;;  %s47_s15 = int_to_ptr.hbm [resolvable:$true] %s46_s15 }
   0x8   :  { %26 = dma.hbm_to_vmem [thread:$0]  %s22_s8, 448, %s24_s12, [#allocation3]  }
   0x9   :  { %s61_s17 = sshll.u32 %s1337_s5, 4  ;;  %s1265_s18 = smov [#allocation7]   ;;  %s62_s17 = int_to_ptr.hbm [resolvable:$true] %s61_s17 }
   0xa   :  { %s48_s19 = sshll.u32 %s1265_s18, 4  ;;  %s1266_s0 = smov [#allocation8]   ;;  %s49_s19 = int_to_ptr.vmem [resolvable:$true] %s48_s19 }
   0xb   :  { %54 = dma.hbm_to_vmem [thread:$0]  %s47_s15, 1024, %s49_s19, [#allocation6], %s1262_s9, %s1262_s9, %s1263_s10  }
   0xc   :  { %s63_s20 = sshll.u32 %s1266_s0, 4  ;;  %s64_s20 = int_to_ptr.vmem [resolvable:$true] %s63_s20 }
   0xd   :  { %69 = dma.hbm_to_vmem [thread:$0]  %s62_s17, 1024, %s64_s20, [#allocation9], %s1262_s9, %s1262_s9, %s1263_s10  }
   0xe   :  { %1253 = dma.done.wait [#allocation3], 448  }
   0xf   :  { %1254 = vsyncadd [#allocation3], 4294966848 }
  0x10   :  { %1255 = dma.done.wait [#allocation6], 7296  }
  0x11   :  { %1256 = vsyncadd [#allocation6], 4294960000 }
  0x12   :  { %1257 = dma.done.wait [#allocation9], 1024  }
  0x13   :  { %1258 = vsyncadd [#allocation9], 4294966272  ;;  %v1065_v0 = vld [vmem:[#allocation5 + $0x38] sm:$0xff]  ;;  %v1064_v3 = vld [vmem:[#allocation5 + $0x30] sm:$0xff]  ;;  %vm516_vm0 = vcmask 1044480   ;;  %vm512_vm1 = vcmask 80896  }
  0x14   :  { %v1073_v1 = vld [vmem:[#allocation5 + $0x78] sm:$0xff]  ;;  %520 = vmatpush.bf16.msra.mxu0 %v1065_v0  ;;  %v1072_v4 = vld [vmem:[#allocation5 + $0x70] sm:$0xff]  ;;  %v1063_v8 = vld [vmem:[#allocation5 + $0x28] sm:$0xff]  ;;  %s1267_s24 = smov [#allocation10]   ;;  %s785_s28 = sshll.u32 %s1339_s7, 4  ;;  %s786_s28 = int_to_ptr.hbm [resolvable:$true] %s785_s28 }
  0x15   :  { %v1081_v2 = vld [vmem:[#allocation5 + $0xb8] sm:$0xff]  ;;  %533 = vmatpush.bf16.msra.mxu1 %v1073_v1  ;;  %v1080_v5 = vld [vmem:[#allocation5 + $0xb0] sm:$0xff]  ;;  %v1071_v9 = vld [vmem:[#allocation5 + $0x68] sm:$0xff]  ;;  %s783_s25 = sshll.u32 %s1267_s24, 4  ;;  %s784_s25 = int_to_ptr.vmem [resolvable:$true] %s783_s25 }
  0x16   :  { %546 = vmatpush.bf16.msra.mxu2 %v1081_v2  ;;  %v1089_v6 = vld [vmem:[#allocation5 + $0xf8] sm:$0xff]  ;;  %v1088_v7 = vld [vmem:[#allocation5 + $0xf0] sm:$0xff]  ;;  %v1079_v10 = vld [vmem:[#allocation5 + $0xa8] sm:$0xff] }
  0x17   :  { %559 = vmatpush.bf16.msra.mxu3 %v1089_v6  ;;  %v1087_v11 = vld [vmem:[#allocation5 + $0xe8] sm:$0xff]  ;;  %v1062_v12 = vld [vmem:[#allocation5 + $0x20] sm:$0xff]  ;;  %v1061_v16 = vld [vmem:[#allocation5 + $0x18] sm:$0xff] }
  0x18   :  { %521 = vmatpush.bf16.msra.mxu0 %v1064_v3  ;;  %v1070_v13 = vld [vmem:[#allocation5 + $0x60] sm:$0xff]  ;;  %v1069_v17 = vld [vmem:[#allocation5 + $0x58] sm:$0xff]  ;;  %v1060_v20 = vld [vmem:[#allocation5 + $0x10] sm:$0xff] }
  0x19   :  { %534 = vmatpush.bf16.msra.mxu1 %v1072_v4  ;;  %v1078_v14 = vld [vmem:[#allocation5 + $0xa0] sm:$0xff]  ;;  %v1077_v18 = vld [vmem:[#allocation5 + $0x98] sm:$0xff]  ;;  %v1068_v21 = vld [vmem:[#allocation5 + $0x50] sm:$0xff] }
  0x1a   :  { %547 = vmatpush.bf16.msra.mxu2 %v1080_v5  ;;  %v1086_v15 = vld [vmem:[#allocation5 + $0xe0] sm:$0xff]  ;;  %v1085_v19 = vld [vmem:[#allocation5 + $0xd8] sm:$0xff]  ;;  %v1076_v22 = vld [vmem:[#allocation5 + $0x90] sm:$0xff] }
  0x1b   :  { %560 = vmatpush.bf16.msra.mxu3 %v1088_v7  ;;  %v1084_v23 = vld [vmem:[#allocation5 + $0xd0] sm:$0xff]  ;;  %v1059_v24 = vld [vmem:[#allocation5 + $0x8] sm:$0xff]  ;;  %v991_v28 = vld [vmem:[#allocation5 + $0x180] sm:$0xf] }
  0x1c   :  { %522 = vmatpush.bf16.msra.mxu0 %v1063_v8  ;;  %v1067_v25 = vld [vmem:[#allocation5 + $0x48] sm:$0xff]  ;;  %v1106_v29 = vld [vmem:[#allocation5 + $0x180] sm:$0x10]  ;;  %v1097_v36 = vld [vmem:[#allocation5 + $0x138] sm:$0xff] }
  0x1d   :  { %535 = vmatpush.bf16.msra.mxu1 %v1071_v9  ;;  %v89_v26 = vld [vmem:[#allocation2] sm:$0xff]  ;;  %v90_v30 = vld [vmem:[#allocation2 + $0x8] sm:$0xff]  ;;  %v1105_v37 = vld [vmem:[#allocation5 + $0x178] sm:$0xff]  ;;  %v992_v38 = vor.u32 %v1106_v29, %v991_v28 }
  0x1e   :  { %548 = vmatpush.bf16.msra.mxu2 %v1079_v10  ;;  %v1075_v27 = vld [vmem:[#allocation5 + $0x88] sm:$0xff]  ;;  %v199_v31 = vunpack.c.l.b16 %v89_v26  ;;  %v200_v33 = vunpack.c.h.b16 %v89_v26  ;;  %v1058_v34 = vld [vmem:[#allocation5] sm:$0xff]  ;;  %v201_v40 = vunpack.c.l.b16 %v90_v30  ;;  %v202_v43 = vunpack.c.h.b16 %v90_v30  ;;  %v1096_v45 = vld [vmem:[#allocation5 + $0x130] sm:$0xff] }
  0x1f   :  { %561 = vmatpush.bf16.msra.mxu3 %v1087_v11  ;;  %v1083_v32 = vld [vmem:[#allocation5 + $0xc8] sm:$0xff]  ;;  %v1066_v35 = vld [vmem:[#allocation5 + $0x40] sm:$0xff]  ;;  %v1104_v46 = vld [vmem:[#allocation5 + $0x170] sm:$0xff]  ;;  %v518_v47 = vsel %vm516_vm0, %v992_v38, 0 }
  0x20   :  { %523 = vmatpush.bf16.msra.mxu0 %v1062_v12  ;;  %v1074_v39 = vld [vmem:[#allocation5 + $0x80] sm:$0xff]  ;;  %v206_v41 = vpack.c.b16 %v199_v31, %v199_v31  ;;  %v207_v42 = vpack.c.b16 %v200_v33, %v200_v33  ;;  %v208_v48 = vpack.c.b16 %v201_v40, %v201_v40  ;;  %v209_v49 = vpack.c.b16 %v202_v43, %v202_v43  ;;  %v1095_v50 = vld [vmem:[#allocation5 + $0x128] sm:$0xff]  ;;  %v92_v54 = vld [vmem:[#allocation2 + $0x18] sm:$0xf] }
  0x21   :  { %536 = vmatpush.bf16.msra.mxu1 %v1070_v13  ;;  %v1082_v44 = vld [vmem:[#allocation5 + $0xc0] sm:$0xff]  ;;  %v1103_v51 = vld [vmem:[#allocation5 + $0x168] sm:$0xff]  ;;  %v1093_v55 = vld [vmem:[#allocation5 + $0x118] sm:$0xff]  ;;  %v205_v57 = vunpack.c.l.b16 %v92_v54 }
  0x22   :  { %549 = vmatpush.bf16.msra.mxu2 %v1078_v14  ;;  %v1094_v52 = vld [vmem:[#allocation5 + $0x120] sm:$0xff]  ;;  %v1101_v56 = vld [vmem:[#allocation5 + $0x158] sm:$0xff]  ;;  %v1092_v58 = vld [vmem:[#allocation5 + $0x110] sm:$0xff] }
  0x23   :  { %562 = vmatpush.bf16.msra.mxu3 %v1086_v15  ;;  %v1102_v53 = vld [vmem:[#allocation5 + $0x160] sm:$0xff]  ;;  %v1100_v59 = vld [vmem:[#allocation5 + $0x150] sm:$0xff]  ;;  %v212_v60 = vpack.c.b16 %v205_v57, %v205_v57  ;;  %v1091_v61 = vld [vmem:[#allocation5 + $0x108] sm:$0xff] }
  0x24   :  { %524 = vmatpush.bf16.msra.mxu0 %v1061_v16  ;;  %v1099_v62 = vld [vmem:[#allocation5 + $0x148] sm:$0xff]  ;;  %v91_v63 = vld [vmem:[#allocation2 + $0x10] sm:$0xff]  ;;  %v1090_v2 = vld [vmem:[#allocation5 + $0x100] sm:$0xff] }
  0x25   :  { %537 = vmatpush.bf16.msra.mxu1 %v1069_v17  ;;  %v203_v0 = vunpack.c.l.b16 %v91_v63  ;;  %v204_v1 = vunpack.c.h.b16 %v91_v63  ;;  %v1098_v3 = vld [vmem:[#allocation5 + $0x140] sm:$0xff]  ;;  %v1113_v7 = vld [vmem:[#allocation7 + $0x30] sm:$0xff]  ;;  %v1112_v8 = vld [vmem:[#allocation7 + $0x28] sm:$0xff] }
  0x26   :  { %550 = vmatpush.bf16.msra.mxu2 %v1077_v18  ;;  %v1114_v6 = vld [vmem:[#allocation7 + $0x38] sm:$0xff]  ;;  %v1111_v9 = vld [vmem:[#allocation7 + $0x20] sm:$0xff]  ;;  %v1109_v11 = vld [vmem:[#allocation7 + $0x10] sm:$0xff] }
  0x27   :  { %563 = vmatpush.bf16.msra.mxu3 %v1085_v19  ;;  %v210_v4 = vpack.c.b16 %v203_v0, %v203_v0  ;;  %v211_v5 = vpack.c.b16 %v204_v1, %v204_v1  ;;  %v1110_v10 = vld [vmem:[#allocation7 + $0x18] sm:$0xff]  ;;  %v1108_v12 = vld [vmem:[#allocation7 + $0x8] sm:$0xff]  ;;  %v1107_v15 = vld [vmem:[#allocation7] sm:$0xff] }
  0x28   :  { %525 = vmatpush.bf16.msra.mxu0 %v1060_v20  ;;  %v1122_v18 = vld [vmem:[#allocation8 + $0x38] sm:$0xff] }
  0x29   :  { %538 = vmatpush.bf16.msra.mxu1 %v1068_v21  ;;  %v1121_v21 = vld [vmem:[#allocation8 + $0x30] sm:$0xff]  ;;  %v1118_v29 = vld [vmem:[#allocation8 + $0x18] sm:$0xff] }
  0x2a   :  { %551 = vmatpush.bf16.msra.mxu2 %v1076_v22  ;;  %v1130_v22 = vld [vmem:[%s1334_s2] ss:$0 sm:$0xff] }
  0x2b   :  { %564 = vmatpush.bf16.msra.mxu3 %v1084_v23  ;;  %v1120_v23 = vld [vmem:[#allocation8 + $0x28] sm:$0xff] }
  0x2c   :  { %526 = vmatpush.bf16.msra.mxu0 %v1059_v24 }
  0x2d   :  { %539 = vmatpush.bf16.msra.mxu1 %v1067_v25 }
  0x2e   :  { %552 = vmatpush.bf16.msra.mxu2 %v1075_v27  ;;  %v1119_v27 = vld [vmem:[#allocation8 + $0x20] sm:$0xff] }
  0x2f   :  { %565 = vmatpush.bf16.msra.mxu3 %v1083_v32  ;;  %v1117_v32 = vld [vmem:[#allocation8 + $0x10] sm:$0xff] }
  0x30   :  { %527 = vmatpush.bf16.msra.mxu0 %v1058_v34 }
  0x31   :  { %540 = vmatpush.bf16.msra.mxu1 %v1066_v35 }
  0x32   :  { %553 = vmatpush.bf16.msra.mxu2 %v1074_v39 }
  0x33   :  { %528 = vmatmul.bf16.vlgmr.msra.gmra.mxu0 %v206_v41  ;;  %566 = vmatpush.bf16.msra.mxu3 %v1082_v44  ;;  %v1116_v44 = vld [vmem:[#allocation8 + $0x8] sm:$0xff] }
  0x34   :  { %572 = vmatpush.bf16.msrb.mxu0 %v1097_v36  ;;  %541 = vmatmul.bf16.vlgmr.msra.gmra.mxu1 %v207_v42 }
  0x35   :  { %585 = vmatpush.bf16.msrb.mxu1 %v1105_v37  ;;  %554 = vmatmul.bf16.vlgmr.msra.gmra.mxu2 %v208_v48 }
  0x36   :  { %605 = vmatpush.bf16.msrb.mxu2 %v518_v47  ;;  %567 = vmatmul.bf16.vlgmr.msra.gmra.mxu3 %v209_v49 }
  0x37   :  { %681 = vmatpush.bf16.msrb.mxu3 %v1114_v6 }
  0x38   :  { %573 = vmatpush.bf16.msrb.mxu0 %v1096_v45  ;;  %v1115_v45 = vld [vmem:[#allocation8] sm:$0xff] }
  0x39   :  { %586 = vmatpush.bf16.msrb.mxu1 %v1104_v46  ;;  %v1131_v46 = vld [vmem:[%s1336_s4] ss:$0 sm:$0xff] }
  0x3a   :  { %764 = vmatpush.bf16.msra.mxu2 %v1122_v18 }
  0x3b   :  { %682 = vmatpush.bf16.msrb.mxu3 %v1113_v7 }
  0x3c   :  { %574 = vmatpush.bf16.msrb.mxu0 %v1095_v50 }
  0x3d   :  { %587 = vmatpush.bf16.msrb.mxu1 %v1103_v51 }
  0x3e   :  { %765 = vmatpush.bf16.msra.mxu2 %v1121_v21 }
  0x3f   :  { %683 = vmatpush.bf16.msrb.mxu3 %v1112_v8 }
  0x40   :  { %575 = vmatpush.bf16.msrb.mxu0 %v1094_v52  ;;  %v1132_v52 = vld [vmem:[%s1338_s6] ss:$0 sm:$0xff] }
  0x41   :  { %588 = vmatpush.bf16.msrb.mxu1 %v1102_v53 }
  0x42   :  { %766 = vmatpush.bf16.msra.mxu2 %v1120_v23 }
  0x43   :  { %684 = vmatpush.bf16.msrb.mxu3 %v1111_v9 }
  0x44   :  { %576 = vmatpush.bf16.msrb.mxu0 %v1093_v55 }
  0x45   :  { %589 = vmatpush.bf16.msrb.mxu1 %v1101_v56  ;;  %993 = vmatmul.msk.bf16.vlgmr.msrb.gmra.mxu2 %vm512_vm1, %v212_v60 }
  0x46   :  { %767 = vmatpush.bf16.msra.mxu2 %v1119_v27 }
  0x47   :  { %685 = vmatpush.bf16.msrb.mxu3 %v1110_v10 }
  0x48   :  { %577 = vmatpush.bf16.msrb.mxu0 %v1092_v58 }
  0x49   :  { %590 = vmatpush.bf16.msrb.mxu1 %v1100_v59 }
  0x4a   :  { %768 = vmatpush.bf16.msra.mxu2 %v1118_v29 }
  0x4b   :  { %686 = vmatpush.bf16.msrb.mxu3 %v1109_v11 }
  0x4c   :  { %578 = vmatpush.bf16.msrb.mxu0 %v1091_v61 }
  0x4d   :  { %591 = vmatpush.bf16.msrb.mxu1 %v1099_v62 }
  0x4e   :  { %769 = vmatpush.bf16.msra.mxu2 %v1117_v32 }
  0x4f   :  { %687 = vmatpush.bf16.msrb.mxu3 %v1108_v12 }
  0x50   :  { %579 = vmatpush.bf16.msrb.mxu0 %v1090_v2 }
  0x51   :  { %592 = vmatpush.bf16.msrb.mxu1 %v1098_v3 }
  0x52   :  { %770 = vmatpush.bf16.msra.mxu2 %v1116_v44 }
  0x53   :  { %580 = vmatmul.bf16.vlgmr.msrb.gmra.mxu0 %v210_v4  ;;  %688 = vmatpush.bf16.msrb.mxu3 %v1107_v15 }
  0x54   :  { %593 = vmatmul.bf16.vlgmr.msrb.gmra.mxu1 %v211_v5 }
  0x56   :  { %771 = vmatpush.bf16.msra.mxu2 %v1115_v45 }
  0xb0   :  { %v529_v13 = vpop.f32.mrf.mxu0 }
  0xb1   :  { %v542_v14 = vpop.f32.mrf.mxu1  ;;  %v530_v24 = vadd.f32 %v1130_v22, %v529_v13 }
  0xb3   :  { %v543_v28 = vadd.f32 %v542_v14, %v530_v24 }
  0xb8   :  { %v531_v16 = vpop.f32.mrf.mxu0  ;;  %v555_v19 = vpop.f32.mrf.mxu2 }
  0xb9   :  { %v544_v17 = vpop.f32.mrf.mxu1  ;;  %v568_v20 = vpop.f32.mrf.mxu3  ;;  %v556_v30 = vadd.f32 %v555_v19, %v543_v28 }
  0xbb   :  { %v569_v33 = vadd.f32 %v568_v20, %v556_v30 }
  0xc0   :  { %v557_v25 = vpop.f32.mrf.mxu2 }
  0xc1   :  { %v570_v26 = vpop.f32.mrf.mxu3 }
  0xc8   :  { %v607_v31 = vpop.f32.mrf.mxu2 }
  0xd0   :  { %v581_v34 = vpop.f32.mrf.mxu0  ;;  %v609_v38 = vpop.f32.mrf.mxu2 }
  0xd1   :  { %v594_v35 = vpop.f32.mrf.mxu1  ;;  %v582_v36 = vadd.f32 %v581_v34, %v569_v33 }
  0xd3   :  { %v595_v37 = vadd.f32 %v594_v35, %v582_v36 }
  0xd5   :  { %v608_v39 = vadd.f32 %v607_v31, %v595_v37 }
  0xd7   :  { %v611_v40 = vmax.f32 %v608_v39, 0.0 }
  0xd8   :  { %v583_v41 = vpop.f32.mrf.mxu0 }
  0xd9   :  { %v596_v42 = vpop.f32.mrf.mxu1  ;;  %v612_v43 = vpack.c.bf16 %v611_v40, %v611_v40 }
  0xdb   :  { %689 = vmatmul.bf16.vlgmr.msrb.gmra.mxu3 %v612_v43 }
 0x15e   :  { %v690_v47 = vpop.f32.mrf.mxu3 }
 0x15f   :  { %v691_v48 = vadd.f32 %v1131_v46, %v690_v47 }
 0x161   :  { %v694_v49 = vmax.f32 %v691_v48, 0.0 }
 0x163   :  { %v695_v50 = vpack.c.bf16 %v694_v49, %v694_v49 }
 0x165   :  { %772 = vmatmul.bf16.vlgmr.msra.gmra.mxu2 %v695_v50 }
 0x166   :  { %v692_v51 = vpop.f32.mrf.mxu3 }
 0x1e8   :  { %v773_v53 = vpop.f32.mrf.mxu2 }
 0x1e9   :  { %v774_v54 = vadd.f32 %v1132_v52, %v773_v53 }
 0x1eb   :  { %777 = vst [vmem:[#allocation10] sm:$0xff] %v774_v54 }
 0x1ec   :  { %788 = dma.vmem_to_hbm [thread:$0]  %s784_s25, 128, %s786_s28, [#allocation4]  }
 0x1f0   :  { %v775_v55 = vpop.f32.mrf.mxu2 }
 0x1f1   :  { %1259 = dma.done.wait [#allocation4], 128  }
 0x1f2   :  { %1260 = vsyncadd [#allocation4], 4294967168 }
 0x1f3   :  { %793 = vsyncpa [#allocation3], 1 }
 0x1f4   :  { %794 = vsyncpa [#allocation6], 1 }
 0x1f5   :  { %795 = vsyncpa [#allocation9], 1 }
 0x1f6   :  { %796 = vsyncpa [#allocation4], 1 }

</bundles_post_ra>
